<compile_context>
chip_gen: v7x
topology: tpu7x:2x2x1
jax: 0.10.0
libtpu: 0.0.40
codegen_flags: <defaults>
</compile_context>

<pallas_src>
import functools

import jax
import jax.numpy as jnp
from jax import lax
from jax.experimental import pallas as pl
from jax.experimental.pallas import tpu as pltpu


def encoder_layer_kernel(
    x_ref,                       # (R, D) f32, R = S*B, row r = s*B + b (s-major, b-minor)
    wq_ref, wk_ref, wv_ref,      # (D, D) bf16, pre-transposed (q = x @ wq + bq); scale folded into wq
    bq_ref, bk_ref, bv_ref,      # (1, D) f32  (scale folded into bq)
    wo_ref, bo_ref,              # (D, D) bf16, (1, D) f32
    w1_ref, b1_ref,              # (D, F) bf16, (1, F) f32
    w2_ref, b2_ref,              # (F, D) bf16, (1, D) f32
    g1_ref, be1_ref,             # (1, D) f32  layernorm1 weight / bias
    g2_ref, be2_ref,             # (1, D) f32  layernorm2 weight / bias
    o_ref,                       # (R, D)
    *, batch, nhead, eps,
):
    R, D = x_ref.shape
    hd = D // nhead

    x = x_ref[...].astype(jnp.float32)          # kept live only for the first residual
    x_bf = x.astype(jnp.bfloat16)

    # ---- QKV projections on the flat (R, D) slab (1/sqrt(hd) already folded into wq / bq) ----
    q = jnp.dot(x_bf, wq_ref[...], preferred_element_type=jnp.float32) + bq_ref[...]
    k = jnp.dot(x_bf, wk_ref[...], preferred_element_type=jnp.float32) + bk_ref[...]
    v = jnp.dot(x_bf, wv_ref[...], preferred_element_type=jnp.float32) + bv_ref[...]

    # ---- multi-head self attention, batched over heads via a leading batch dim ----
    # (nhead, R, hd) operands -> two batched dot_generals cover all heads and all batch elements.
    qh = jnp.stack([q[:, h * hd:(h + 1) * hd] for h in range(nhead)], axis=0).astype(jnp.bfloat16)
    kh = jnp.stack([k[:, h * hd:(h + 1) * hd] for h in range(nhead)], axis=0).astype(jnp.bfloat16)
    vh = jnp.stack([v[:, h * hd:(h + 1) * hd] for h in range(nhead)], axis=0).astype(jnp.bfloat16)

    s = jnp.einsum('hrd,hpd->hrp', qh, kh,
                   preferred_element_type=jnp.float32)                     # (H, R, R) f32

    # Block-diagonal batch mask: row r (batch r % B) only attends to rows of the same batch.
    rb = lax.broadcasted_iota(jnp.int32, (R, R), 0) % batch
    cb = lax.broadcasted_iota(jnp.int32, (R, R), 1) % batch
    s = jnp.where((rb == cb)[None, :, :], s, -1e30)

    m = jnp.max(s, axis=-1, keepdims=True)
    p = jnp.exp(s - m)
    l = jnp.sum(p, axis=-1, keepdims=True)                                 # (H, R, 1)
    pv = jnp.einsum('hrp,hpd->hrd', p.astype(jnp.bfloat16), vh,
                    preferred_element_type=jnp.float32)                    # (H, R, hd), unnormalized
    pv = pv / l                                                            # exact deferred softmax norm

    # Assemble heads along lanes (in-vreg placement, D <= 128) -> single D-wide output projection.
    attn = jnp.concatenate([pv[h] for h in range(nhead)], axis=-1)         # (R, D) f32
    attn = jnp.dot(attn.astype(jnp.bfloat16), wo_ref[...],
                   preferred_element_type=jnp.float32) + bo_ref[...]
    # dropout1: identity (eval)

    # ---- residual + layernorm 1 (post-norm), fused mean/var, f32 ----
    inv_d = 1.0 / D
    x1 = x + attn
    mu1 = jnp.sum(x1, axis=-1, keepdims=True) * inv_d
    var1 = jnp.sum(x1 * x1, axis=-1, keepdims=True) * inv_d - mu1 * mu1
    x1 = (x1 - mu1) * lax.rsqrt(var1 + eps) * g1_ref[...] + be1_ref[...]

    # ---- feedforward: linear1 -> relu -> (dropout: identity) -> linear2 ----
    h1 = jnp.dot(x1.astype(jnp.bfloat16), w1_ref[...],
                 preferred_element_type=jnp.float32) + b1_ref[...]
    h1 = jnp.maximum(h1, 0.0)
    ff = jnp.dot(h1.astype(jnp.bfloat16), w2_ref[...],
                 preferred_element_type=jnp.float32) + b2_ref[...]
    # dropout2: identity (eval)

    # ---- residual + layernorm 2, fused mean/var, f32 ----
    x2 = x1 + ff
    mu2 = jnp.sum(x2, axis=-1, keepdims=True) * inv_d
    var2 = jnp.sum(x2 * x2, axis=-1, keepdims=True) * inv_d - mu2 * mu2
    y = (x2 - mu2) * lax.rsqrt(var2 + eps) * g2_ref[...] + be2_ref[...]

    o_ref[...] = y.astype(o_ref.dtype)      # one flat lane-dense store


def transformer_encoder_layer(src, params, *, nhead, eps=1e-5):
    """src: (S, B, D) float32 (batch_first=False, the PyTorch default).

    The (S,B,D)->(S*B,D) reshape below collapses contiguous leading dims: it is free at the XLA
    level (no HBM transpose) and lets the kernel work on a flat, lane-dense slab.
    """
    S, B, D = src.shape
    x2d = src.reshape(S * B, D)
    out2d = pl.pallas_call(
        functools.partial(encoder_layer_kernel, batch=B, nhead=nhead, eps=eps),
        out_shape=jax.ShapeDtypeStruct((S * B, D), src.dtype),
        # 32 MiB scoped VMEM is safe on v5e/v6e (128 MiB physical) and v7x (64 MiB physical).
        compiler_params=pltpu.CompilerParams(vmem_limit_bytes=32 * 1024 * 1024),
    )(
        x2d,
        params["wq"], params["wk"], params["wv"],
        params["bq"], params["bk"], params["bv"],
        params["wo"], params["bo"],
        params["w1"], params["b1"],
        params["w2"], params["b2"],
        params["g1"], params["be1"],
        params["g2"], params["be2"],
    )
    return out2d.reshape(S, B, D)


def make_params(key, d_model, nhead, dim_feedforward):
    ks = jax.random.split(key, 10)
    s = 0.05
    D, F = d_model, dim_feedforward
    hd = D // nhead
    assert D % nhead == 0, "d_model must be divisible by nhead"
    scale = 1.0 / float(hd) ** 0.5
    wq = jax.random.normal(ks[0], (D, D), jnp.float32) * s
    bq = jax.random.normal(ks[3], (1, D), jnp.float32) * s
    # Weights stored pre-transposed (kernel does x @ W + b), matmul operands in bf16 for the MXU,
    # 1/sqrt(head_dim) folded into the query projection (wq, bq).
    return {
        "wq": (wq * scale).astype(jnp.bfloat16),
        "wk": (jax.random.normal(ks[1], (D, D), jnp.float32) * s).astype(jnp.bfloat16),
        "wv": (jax.random.normal(ks[2], (D, D), jnp.float32) * s).astype(jnp.bfloat16),
        "bq": bq * scale,
        "bk": jax.random.normal(ks[4], (1, D), jnp.float32) * s,
        "bv": jax.random.normal(ks[5], (1, D), jnp.float32) * s,
        "wo": (jax.random.normal(ks[6], (D, D), jnp.float32) * s).astype(jnp.bfloat16),
        "bo": jnp.zeros((1, D), jnp.float32),
        "w1": (jax.random.normal(ks[7], (D, F), jnp.float32) * s).astype(jnp.bfloat16),
        "b1": jnp.zeros((1, F), jnp.float32),
        "w2": (jax.random.normal(ks[8], (F, D), jnp.float32) * s).astype(jnp.bfloat16),
        "b2": jnp.zeros((1, D), jnp.float32),
        "g1": jnp.ones((1, D), jnp.float32),
        "be1": jnp.zeros((1, D), jnp.float32),
        "g2": jnp.ones((1, D), jnp.float32),
        "be2": jnp.zeros((1, D), jnp.float32),
    }


def reference(src, params, *, nhead, eps=1e-5):
    """Pure-JAX f32 reference (same folded/pre-transposed params, weights upcast to f32)."""
    S, B, D = src.shape
    hd = D // nhead
    f = lambda n: params[n].astype(jnp.float32)
    wq, wk, wv, wo, w1, w2 = f("wq"), f("wk"), f("wv"), f("wo"), f("w1"), f("w2")

    def one(xb):  # (S, D); 1/sqrt(hd) already folded into wq/bq
        q = xb @ wq + params["bq"]
        k = xb @ wk + params["bk"]
        v = xb @ wv + params["bv"]
        heads = []
        for h in range(nhead):
            sl = slice(h * hd, (h + 1) * hd)
            p = jax.nn.softmax(q[:, sl] @ k[:, sl].T, axis=-1)
            heads.append(p @ v[:, sl])
        attn = jnp.concatenate(heads, axis=-1) @ wo + params["bo"]
        x1 = xb + attn
        x1 = (x1 - x1.mean(-1, keepdims=True)) / jnp.sqrt(x1.var(-1, keepdims=True) + eps)
        x1 = x1 * params["g1"] + params["be1"]
        ff = jnp.maximum(x1 @ w1 + params["b1"], 0.0) @ w2 + params["b2"]
        x2 = x1 + ff
        x2 = (x2 - x2.mean(-1, keepdims=True)) / jnp.sqrt(x2.var(-1, keepdims=True) + eps)
        return x2 * params["g2"] + params["be2"]

    return jnp.stack([one(src[:, b, :]) for b in range(B)], axis=1)


if __name__ == "__main__":
    # small shapes: seq=8, batch=2, d_model=32, nhead=4, dim_feedforward=64
    S, B, D, NHEAD, FF = 8, 2, 32, 4, 64
    key = jax.random.PRNGKey(0)
    k_src, k_par = jax.random.split(key)
    src = jax.random.normal(k_src, (S, B, D), jnp.float32)   # (seq, batch, feature)
    params = make_params(k_par, D, NHEAD, FF)

    out = jax.block_until_ready(transformer_encoder_layer(src, params, nhead=NHEAD, eps=1e-5))
    ref = reference(src, params, nhead=NHEAD, eps=1e-5)

    assert out.shape == (S, B, D)
    assert bool(jnp.all(jnp.isfinite(out)))
    max_err = float(jnp.max(jnp.abs(out - ref)))
    assert max_err < 1e-1, f"max abs error vs reference: {max_err}"
    print("KERNEL_OK")
</pallas_src>

<mosaic_0001>
module attributes {stable_mosaic.version = 11 : i64} {
  func.func @encoder_layer_kernel(%arg0: memref<16x32xf32, #tpu.memory_space<vmem>>, %arg1: memref<32x32xbf16, #tpu.memory_space<vmem>>, %arg2: memref<32x32xbf16, #tpu.memory_space<vmem>>, %arg3: memref<32x32xbf16, #tpu.memory_space<vmem>>, %arg4: memref<1x32xf32, #tpu.memory_space<vmem>>, %arg5: memref<1x32xf32, #tpu.memory_space<vmem>>, %arg6: memref<1x32xf32, #tpu.memory_space<vmem>>, %arg7: memref<32x32xbf16, #tpu.memory_space<vmem>>, %arg8: memref<1x32xf32, #tpu.memory_space<vmem>>, %arg9: memref<32x64xbf16, #tpu.memory_space<vmem>>, %arg10: memref<1x64xf32, #tpu.memory_space<vmem>>, %arg11: memref<64x32xbf16, #tpu.memory_space<vmem>>, %arg12: memref<1x32xf32, #tpu.memory_space<vmem>>, %arg13: memref<1x32xf32, #tpu.memory_space<vmem>>, %arg14: memref<1x32xf32, #tpu.memory_space<vmem>>, %arg15: memref<1x32xf32, #tpu.memory_space<vmem>>, %arg16: memref<1x32xf32, #tpu.memory_space<vmem>>, %arg17: memref<16x32xf32, #tpu.memory_space<vmem>>) attributes {dimension_semantics = [], scalar_prefetch = 0 : i64, scratch_operands = 0 : i64, tpu.core_type = #tpu.core_type<tc>} {
    %c0 = arith.constant 0 : index
    %c0_0 = arith.constant 0 : index
    %0 = vector.load %arg0[%c0, %c0_0] : memref<16x32xf32, #tpu.memory_space<vmem>>, vector<16x32xf32>
    %1 = arith.truncf %0 : vector<16x32xf32> to vector<16x32xbf16>
    %c0_1 = arith.constant 0 : index
    %c0_2 = arith.constant 0 : index
    %2 = vector.load %arg1[%c0_1, %c0_2] : memref<32x32xbf16, #tpu.memory_space<vmem>>, vector<32x32xbf16>
    %cst = arith.constant dense<0.000000e+00> : vector<16x32xf32>
    %3 = tpu.matmul %1, %2, %cst {dimension_numbers = #tpu.dot_dimension_numbers<[1], [0], [0], [1], [0, 0, 1, 1], [], []>} : vector<16x32xbf16>, vector<32x32xbf16>, vector<16x32xf32> -> vector<16x32xf32>
    %c0_3 = arith.constant 0 : index
    %c0_4 = arith.constant 0 : index
    %4 = vector.load %arg4[%c0_3, %c0_4] : memref<1x32xf32, #tpu.memory_space<vmem>>, vector<1x32xf32>
    %5 = vector.broadcast %4 : vector<1x32xf32> to vector<16x32xf32>
    %6 = arith.addf %3, %5 : vector<16x32xf32>
    %c0_5 = arith.constant 0 : index
    %c0_6 = arith.constant 0 : index
    %7 = vector.load %arg2[%c0_5, %c0_6] : memref<32x32xbf16, #tpu.memory_space<vmem>>, vector<32x32xbf16>
    %cst_7 = arith.constant dense<0.000000e+00> : vector<16x32xf32>
    %8 = tpu.matmul %1, %7, %cst_7 {dimension_numbers = #tpu.dot_dimension_numbers<[1], [0], [0], [1], [0, 0, 1, 1], [], []>} : vector<16x32xbf16>, vector<32x32xbf16>, vector<16x32xf32> -> vector<16x32xf32>
    %c0_8 = arith.constant 0 : index
    %c0_9 = arith.constant 0 : index
    %9 = vector.load %arg5[%c0_8, %c0_9] : memref<1x32xf32, #tpu.memory_space<vmem>>, vector<1x32xf32>
    %10 = vector.broadcast %9 : vector<1x32xf32> to vector<16x32xf32>
    %11 = arith.addf %8, %10 : vector<16x32xf32>
    %c0_10 = arith.constant 0 : index
    %c0_11 = arith.constant 0 : index
    %12 = vector.load %arg3[%c0_10, %c0_11] : memref<32x32xbf16, #tpu.memory_space<vmem>>, vector<32x32xbf16>
    %cst_12 = arith.constant dense<0.000000e+00> : vector<16x32xf32>
    %13 = tpu.matmul %1, %12, %cst_12 {dimension_numbers = #tpu.dot_dimension_numbers<[1], [0], [0], [1], [0, 0, 1, 1], [], []>} : vector<16x32xbf16>, vector<32x32xbf16>, vector<16x32xf32> -> vector<16x32xf32>
    %c0_13 = arith.constant 0 : index
    %c0_14 = arith.constant 0 : index
    %14 = vector.load %arg6[%c0_13, %c0_14] : memref<1x32xf32, #tpu.memory_space<vmem>>, vector<1x32xf32>
    %15 = vector.broadcast %14 : vector<1x32xf32> to vector<16x32xf32>
    %16 = arith.addf %13, %15 : vector<16x32xf32>
    %17 = vector.extract_strided_slice %6 {offsets = [0, 0], sizes = [16, 8], strides = [1, 1]} : vector<16x32xf32> to vector<16x8xf32>
    %18 = vector.extract_strided_slice %6 {offsets = [0, 8], sizes = [16, 8], strides = [1, 1]} : vector<16x32xf32> to vector<16x8xf32>
    %19 = vector.extract_strided_slice %6 {offsets = [0, 16], sizes = [16, 8], strides = [1, 1]} : vector<16x32xf32> to vector<16x8xf32>
    %20 = vector.extract_strided_slice %6 {offsets = [0, 24], sizes = [16, 8], strides = [1, 1]} : vector<16x32xf32> to vector<16x8xf32>
    %21 = vector.shape_cast %17 : vector<16x8xf32> to vector<1x16x8xf32>
    %22 = vector.shape_cast %18 : vector<16x8xf32> to vector<1x16x8xf32>
    %23 = vector.shape_cast %19 : vector<16x8xf32> to vector<1x16x8xf32>
    %24 = vector.shape_cast %20 : vector<16x8xf32> to vector<1x16x8xf32>
    %25 = tpu.concatenate %21, %22, %23, %24 in 0 : vector<1x16x8xf32>, vector<1x16x8xf32>, vector<1x16x8xf32>, vector<1x16x8xf32> -> vector<4x16x8xf32>
    %26 = arith.truncf %25 : vector<4x16x8xf32> to vector<4x16x8xbf16>
    %27 = vector.extract_strided_slice %11 {offsets = [0, 0], sizes = [16, 8], strides = [1, 1]} : vector<16x32xf32> to vector<16x8xf32>
    %28 = vector.extract_strided_slice %11 {offsets = [0, 8], sizes = [16, 8], strides = [1, 1]} : vector<16x32xf32> to vector<16x8xf32>
    %29 = vector.extract_strided_slice %11 {offsets = [0, 16], sizes = [16, 8], strides = [1, 1]} : vector<16x32xf32> to vector<16x8xf32>
    %30 = vector.extract_strided_slice %11 {offsets = [0, 24], sizes = [16, 8], strides = [1, 1]} : vector<16x32xf32> to vector<16x8xf32>
    %31 = vector.shape_cast %27 : vector<16x8xf32> to vector<1x16x8xf32>
    %32 = vector.shape_cast %28 : vector<16x8xf32> to vector<1x16x8xf32>
    %33 = vector.shape_cast %29 : vector<16x8xf32> to vector<1x16x8xf32>
    %34 = vector.shape_cast %30 : vector<16x8xf32> to vector<1x16x8xf32>
    %35 = tpu.concatenate %31, %32, %33, %34 in 0 : vector<1x16x8xf32>, vector<1x16x8xf32>, vector<1x16x8xf32>, vector<1x16x8xf32> -> vector<4x16x8xf32>
    %36 = arith.truncf %35 : vector<4x16x8xf32> to vector<4x16x8xbf16>
    %37 = vector.extract_strided_slice %16 {offsets = [0, 0], sizes = [16, 8], strides = [1, 1]} : vector<16x32xf32> to vector<16x8xf32>
    %38 = vector.extract_strided_slice %16 {offsets = [0, 8], sizes = [16, 8], strides = [1, 1]} : vector<16x32xf32> to vector<16x8xf32>
    %39 = vector.extract_strided_slice %16 {offsets = [0, 16], sizes = [16, 8], strides = [1, 1]} : vector<16x32xf32> to vector<16x8xf32>
    %40 = vector.extract_strided_slice %16 {offsets = [0, 24], sizes = [16, 8], strides = [1, 1]} : vector<16x32xf32> to vector<16x8xf32>
    %41 = vector.shape_cast %37 : vector<16x8xf32> to vector<1x16x8xf32>
    %42 = vector.shape_cast %38 : vector<16x8xf32> to vector<1x16x8xf32>
    %43 = vector.shape_cast %39 : vector<16x8xf32> to vector<1x16x8xf32>
    %44 = vector.shape_cast %40 : vector<16x8xf32> to vector<1x16x8xf32>
    %45 = tpu.concatenate %41, %42, %43, %44 in 0 : vector<1x16x8xf32>, vector<1x16x8xf32>, vector<1x16x8xf32>, vector<1x16x8xf32> -> vector<4x16x8xf32>
    %46 = arith.truncf %45 : vector<4x16x8xf32> to vector<4x16x8xbf16>
    "tpu.trace_start"() <{level = 10 : i32, message = "hrd,hpd->hrp"}> : () -> ()
    %cst_15 = arith.constant dense<0.000000e+00> : vector<4x16x16xf32>
    %47 = tpu.matmul %26, %36, %cst_15 {dimension_numbers = #tpu.dot_dimension_numbers<[2], [2], [1], [1], [0, 0, 0, 1, 1, 1], [0], [0]>} : vector<4x16x8xbf16>, vector<4x16x8xbf16>, vector<4x16x16xf32> -> vector<4x16x16xf32>
    "tpu.trace_stop"() : () -> ()
    %48 = tpu.iota {dimensions = array<i32: 0>} : vector<16x16xi32>
    %c2_i32 = arith.constant 2 : i32
    %c0_i32 = arith.constant 0 : i32
    %49 = arith.cmpi eq, %c2_i32, %c0_i32 : i32
    %c1_i32 = arith.constant 1 : i32
    %50 = arith.select %49, %c1_i32, %c2_i32 : i32
    %51 = vector.broadcast %50 : i32 to vector<16x16xi32>
    %52 = arith.remsi %48, %51 : vector<16x16xi32>
    %c0_i32_16 = arith.constant 0 : i32
    %53 = vector.broadcast %c0_i32_16 : i32 to vector<16x16xi32>
    %54 = arith.cmpi ne, %52, %53 : vector<16x16xi32>
    %c0_i32_17 = arith.constant 0 : i32
    %55 = vector.broadcast %c0_i32_17 : i32 to vector<16x16xi32>
    %56 = arith.cmpi slt, %52, %55 : vector<16x16xi32>
    %c0_i32_18 = arith.constant 0 : i32
    %57 = arith.cmpi slt, %50, %c0_i32_18 : i32
    %58 = vector.broadcast %57 : i1 to vector<16x16xi1>
    %59 = vector.broadcast %58 : vector<16x16xi1> to vector<16x16xi1>
    %60 = arith.xori %56, %59 : vector<16x16xi1>
    %61 = arith.andi %60, %54 : vector<16x16xi1>
    %62 = vector.broadcast %50 : i32 to vector<16x16xi32>
    %63 = arith.addi %52, %62 : vector<16x16xi32>
    %64 = arith.select %61, %63, %52 : vector<16x16xi1>, vector<16x16xi32>
    %65 = tpu.iota {dimensions = array<i32: 1>} : vector<16x16xi32>
    %c2_i32_19 = arith.constant 2 : i32
    %c0_i32_20 = arith.constant 0 : i32
    %66 = arith.cmpi eq, %c2_i32_19, %c0_i32_20 : i32
    %c1_i32_21 = arith.constant 1 : i32
    %67 = arith.select %66, %c1_i32_21, %c2_i32_19 : i32
    %68 = vector.broadcast %67 : i32 to vector<16x16xi32>
    %69 = arith.remsi %65, %68 : vector<16x16xi32>
    %c0_i32_22 = arith.constant 0 : i32
    %70 = vector.broadcast %c0_i32_22 : i32 to vector<16x16xi32>
    %71 = arith.cmpi ne, %69, %70 : vector<16x16xi32>
    %c0_i32_23 = arith.constant 0 : i32
    %72 = vector.broadcast %c0_i32_23 : i32 to vector<16x16xi32>
    %73 = arith.cmpi slt, %69, %72 : vector<16x16xi32>
    %c0_i32_24 = arith.constant 0 : i32
    %74 = arith.cmpi slt, %67, %c0_i32_24 : i32
    %75 = vector.broadcast %74 : i1 to vector<16x16xi1>
    %76 = vector.broadcast %75 : vector<16x16xi1> to vector<16x16xi1>
    %77 = arith.xori %73, %76 : vector<16x16xi1>
    %78 = arith.andi %77, %71 : vector<16x16xi1>
    %79 = vector.broadcast %67 : i32 to vector<16x16xi32>
    %80 = arith.addi %69, %79 : vector<16x16xi32>
    %81 = arith.select %78, %80, %69 : vector<16x16xi1>, vector<16x16xi32>
    %82 = arith.cmpi eq, %64, %81 : vector<16x16xi32>
    %83 = vector.shape_cast %82 : vector<16x16xi1> to vector<1x16x16xi1>
    %cst_25 = arith.constant -1.000000e+30 : f32
    %84 = vector.shape_cast %83 : vector<1x16x16xi1> to vector<1x16x16xi1>
    %85 = vector.broadcast %84 : vector<1x16x16xi1> to vector<4x16x16xi1>
    %86 = vector.broadcast %cst_25 : f32 to vector<4x16x16xf32>
    %87 = arith.select %85, %47, %86 : vector<4x16x16xi1>, vector<4x16x16xf32>
    %cst_26 = arith.constant dense<0xFF800000> : vector<4x16xf32>
    %88 = vector.multi_reduction <maximumf>, %87, %cst_26 [2] : vector<4x16x16xf32> to vector<4x16xf32>
    %89 = vector.shape_cast %88 : vector<4x16xf32> to vector<4x16x1xf32>
    %90 = vector.broadcast %89 : vector<4x16x1xf32> to vector<4x16x16xf32>
    %91 = arith.subf %87, %90 : vector<4x16x16xf32>
    %92 = math.exp %91 : vector<4x16x16xf32>
    %cst_27 = arith.constant dense<0.000000e+00> : vector<4x16xf32>
    %93 = vector.multi_reduction <add>, %92, %cst_27 [2] : vector<4x16x16xf32> to vector<4x16xf32>
    %94 = vector.shape_cast %93 : vector<4x16xf32> to vector<4x16x1xf32>
    %95 = arith.truncf %92 : vector<4x16x16xf32> to vector<4x16x16xbf16>
    "tpu.trace_start"() <{level = 10 : i32, message = "hrp,hpd->hrd"}> : () -> ()
    %cst_28 = arith.constant dense<0.000000e+00> : vector<4x16x8xf32>
    %96 = tpu.matmul %95, %46, %cst_28 {dimension_numbers = #tpu.dot_dimension_numbers<[2], [1], [1], [2], [0, 0, 0, 1, 1, 2], [0], [0]>} : vector<4x16x16xbf16>, vector<4x16x8xbf16>, vector<4x16x8xf32> -> vector<4x16x8xf32>
    "tpu.trace_stop"() : () -> ()
    %97 = vector.broadcast %94 : vector<4x16x1xf32> to vector<4x16x8xf32>
    %98 = arith.divf %96, %97 : vector<4x16x8xf32>
    %99 = vector.extract_strided_slice %98 {offsets = [0, 0, 0], sizes = [1, 16, 8], strides = [1, 1, 1]} : vector<4x16x8xf32> to vector<1x16x8xf32>
    %100 = vector.shape_cast %99 : vector<1x16x8xf32> to vector<16x8xf32>
    %101 = vector.extract_strided_slice %98 {offsets = [1, 0, 0], sizes = [1, 16, 8], strides = [1, 1, 1]} : vector<4x16x8xf32> to vector<1x16x8xf32>
    %102 = vector.shape_cast %101 : vector<1x16x8xf32> to vector<16x8xf32>
    %103 = vector.extract_strided_slice %98 {offsets = [2, 0, 0], sizes = [1, 16, 8], strides = [1, 1, 1]} : vector<4x16x8xf32> to vector<1x16x8xf32>
    %104 = vector.shape_cast %103 : vector<1x16x8xf32> to vector<16x8xf32>
    %105 = vector.extract_strided_slice %98 {offsets = [3, 0, 0], sizes = [1, 16, 8], strides = [1, 1, 1]} : vector<4x16x8xf32> to vector<1x16x8xf32>
    %106 = vector.shape_cast %105 : vector<1x16x8xf32> to vector<16x8xf32>
    %107 = tpu.concatenate %100, %102, %104, %106 in 1 : vector<16x8xf32>, vector<16x8xf32>, vector<16x8xf32>, vector<16x8xf32> -> vector<16x32xf32>
    %108 = arith.truncf %107 : vector<16x32xf32> to vector<16x32xbf16>
    %c0_29 = arith.constant 0 : index
    %c0_30 = arith.constant 0 : index
    %109 = vector.load %arg7[%c0_29, %c0_30] : memref<32x32xbf16, #tpu.memory_space<vmem>>, vector<32x32xbf16>
    %cst_31 = arith.constant dense<0.000000e+00> : vector<16x32xf32>
    %110 = tpu.matmul %108, %109, %cst_31 {dimension_numbers = #tpu.dot_dimension_numbers<[1], [0], [0], [1], [0, 0, 1, 1], [], []>} : vector<16x32xbf16>, vector<32x32xbf16>, vector<16x32xf32> -> vector<16x32xf32>
    %c0_32 = arith.constant 0 : index
    %c0_33 = arith.constant 0 : index
    %111 = vector.load %arg8[%c0_32, %c0_33] : memref<1x32xf32, #tpu.memory_space<vmem>>, vector<1x32xf32>
    %112 = vector.broadcast %111 : vector<1x32xf32> to vector<16x32xf32>
    %113 = arith.addf %110, %112 : vector<16x32xf32>
    %114 = arith.addf %0, %113 : vector<16x32xf32>
    %cst_34 = arith.constant dense<0.000000e+00> : vector<16xf32>
    %115 = vector.multi_reduction <add>, %114, %cst_34 [1] : vector<16x32xf32> to vector<16xf32>
    %116 = vector.shape_cast %115 : vector<16xf32> to vector<16x1xf32>
    %cst_35 = arith.constant 3.125000e-02 : f32
    %117 = vector.broadcast %cst_35 : f32 to vector<16x1xf32>
    %118 = arith.mulf %116, %117 : vector<16x1xf32>
    %119 = arith.mulf %114, %114 : vector<16x32xf32>
    %cst_36 = arith.constant dense<0.000000e+00> : vector<16xf32>
    %120 = vector.multi_reduction <add>, %119, %cst_36 [1] : vector<16x32xf32> to vector<16xf32>
    %121 = vector.shape_cast %120 : vector<16xf32> to vector<16x1xf32>
    %cst_37 = arith.constant 3.125000e-02 : f32
    %122 = vector.broadcast %cst_37 : f32 to vector<16x1xf32>
    %123 = arith.mulf %121, %122 : vector<16x1xf32>
    %124 = arith.mulf %118, %118 : vector<16x1xf32>
    %125 = arith.subf %123, %124 : vector<16x1xf32>
    %126 = vector.broadcast %118 : vector<16x1xf32> to vector<16x32xf32>
    %127 = arith.subf %114, %126 : vector<16x32xf32>
    %cst_38 = arith.constant 9.99999974E-6 : f32
    %128 = vector.broadcast %cst_38 : f32 to vector<16x1xf32>
    %129 = arith.addf %125, %128 : vector<16x1xf32>
    %130 = math.rsqrt %129 : vector<16x1xf32>
    %131 = vector.broadcast %130 : vector<16x1xf32> to vector<16x32xf32>
    %132 = arith.mulf %127, %131 : vector<16x32xf32>
    %c0_39 = arith.constant 0 : index
    %c0_40 = arith.constant 0 : index
    %133 = vector.load %arg13[%c0_39, %c0_40] : memref<1x32xf32, #tpu.memory_space<vmem>>, vector<1x32xf32>
    %134 = vector.broadcast %133 : vector<1x32xf32> to vector<16x32xf32>
    %135 = arith.mulf %132, %134 : vector<16x32xf32>
    %c0_41 = arith.constant 0 : index
    %c0_42 = arith.constant 0 : index
    %136 = vector.load %arg14[%c0_41, %c0_42] : memref<1x32xf32, #tpu.memory_space<vmem>>, vector<1x32xf32>
    %137 = vector.broadcast %136 : vector<1x32xf32> to vector<16x32xf32>
    %138 = arith.addf %135, %137 : vector<16x32xf32>
    %139 = arith.truncf %138 : vector<16x32xf32> to vector<16x32xbf16>
    %c0_43 = arith.constant 0 : index
    %c0_44 = arith.constant 0 : index
    %140 = vector.load %arg9[%c0_43, %c0_44] : memref<32x64xbf16, #tpu.memory_space<vmem>>, vector<32x64xbf16>
    %cst_45 = arith.constant dense<0.000000e+00> : vector<16x64xf32>
    %141 = tpu.matmul %139, %140, %cst_45 {dimension_numbers = #tpu.dot_dimension_numbers<[1], [0], [0], [1], [0, 0, 1, 1], [], []>} : vector<16x32xbf16>, vector<32x64xbf16>, vector<16x64xf32> -> vector<16x64xf32>
    %c0_46 = arith.constant 0 : index
    %c0_47 = arith.constant 0 : index
    %142 = vector.load %arg10[%c0_46, %c0_47] : memref<1x64xf32, #tpu.memory_space<vmem>>, vector<1x64xf32>
    %143 = vector.broadcast %142 : vector<1x64xf32> to vector<16x64xf32>
    %144 = arith.addf %141, %143 : vector<16x64xf32>
    %cst_48 = arith.constant 0.000000e+00 : f32
    %145 = vector.broadcast %cst_48 : f32 to vector<16x64xf32>
    %146 = arith.maximumf %144, %145 : vector<16x64xf32>
    %147 = arith.truncf %146 : vector<16x64xf32> to vector<16x64xbf16>
    %c0_49 = arith.constant 0 : index
    %c0_50 = arith.constant 0 : index
    %148 = vector.load %arg11[%c0_49, %c0_50] : memref<64x32xbf16, #tpu.memory_space<vmem>>, vector<64x32xbf16>
    %cst_51 = arith.constant dense<0.000000e+00> : vector<16x32xf32>
    %149 = tpu.matmul %147, %148, %cst_51 {dimension_numbers = #tpu.dot_dimension_numbers<[1], [0], [0], [1], [0, 0, 1, 1], [], []>} : vector<16x64xbf16>, vector<64x32xbf16>, vector<16x32xf32> -> vector<16x32xf32>
    %c0_52 = arith.constant 0 : index
    %c0_53 = arith.constant 0 : index
    %150 = vector.load %arg12[%c0_52, %c0_53] : memref<1x32xf32, #tpu.memory_space<vmem>>, vector<1x32xf32>
    %151 = vector.broadcast %150 : vector<1x32xf32> to vector<16x32xf32>
    %152 = arith.addf %149, %151 : vector<16x32xf32>
    %153 = arith.addf %138, %152 : vector<16x32xf32>
    %cst_54 = arith.constant dense<0.000000e+00> : vector<16xf32>
    %154 = vector.multi_reduction <add>, %153, %cst_54 [1] : vector<16x32xf32> to vector<16xf32>
    %155 = vector.shape_cast %154 : vector<16xf32> to vector<16x1xf32>
    %cst_55 = arith.constant 3.125000e-02 : f32
    %156 = vector.broadcast %cst_55 : f32 to vector<16x1xf32>
    %157 = arith.mulf %155, %156 : vector<16x1xf32>
    %158 = arith.mulf %153, %153 : vector<16x32xf32>
    %cst_56 = arith.constant dense<0.000000e+00> : vector<16xf32>
    %159 = vector.multi_reduction <add>, %158, %cst_56 [1] : vector<16x32xf32> to vector<16xf32>
    %160 = vector.shape_cast %159 : vector<16xf32> to vector<16x1xf32>
    %cst_57 = arith.constant 3.125000e-02 : f32
    %161 = vector.broadcast %cst_57 : f32 to vector<16x1xf32>
    %162 = arith.mulf %160, %161 : vector<16x1xf32>
    %163 = arith.mulf %157, %157 : vector<16x1xf32>
    %164 = arith.subf %162, %163 : vector<16x1xf32>
    %165 = vector.broadcast %157 : vector<16x1xf32> to vector<16x32xf32>
    %166 = arith.subf %153, %165 : vector<16x32xf32>
    %cst_58 = arith.constant 9.99999974E-6 : f32
    %167 = vector.broadcast %cst_58 : f32 to vector<16x1xf32>
    %168 = arith.addf %164, %167 : vector<16x1xf32>
    %169 = math.rsqrt %168 : vector<16x1xf32>
    %170 = vector.broadcast %169 : vector<16x1xf32> to vector<16x32xf32>
    %171 = arith.mulf %166, %170 : vector<16x32xf32>
    %c0_59 = arith.constant 0 : index
    %c0_60 = arith.constant 0 : index
    %172 = vector.load %arg15[%c0_59, %c0_60] : memref<1x32xf32, #tpu.memory_space<vmem>>, vector<1x32xf32>
    %173 = vector.broadcast %172 : vector<1x32xf32> to vector<16x32xf32>
    %174 = arith.mulf %171, %173 : vector<16x32xf32>
    %c0_61 = arith.constant 0 : index
    %c0_62 = arith.constant 0 : index
    %175 = vector.load %arg16[%c0_61, %c0_62] : memref<1x32xf32, #tpu.memory_space<vmem>>, vector<1x32xf32>
    %176 = vector.broadcast %175 : vector<1x32xf32> to vector<16x32xf32>
    %177 = arith.addf %174, %176 : vector<16x32xf32>
    %c0_63 = arith.constant 0 : index
    %c0_64 = arith.constant 0 : index
    %178 = vector.load %arg17[%c0_63, %c0_64] : memref<16x32xf32, #tpu.memory_space<vmem>>, vector<16x32xf32>
    tpu.vector_store %arg17[%c0_63, %c0_64], %177 {strides = array<i32>} : memref<16x32xf32, #tpu.memory_space<vmem>>, vector<16x32xf32>,
    return
  }
}

</mosaic_0001>

<bundles_post_ra>
// kernel: tpu_custom_call.1
= control target key start
LH: loop header
LB: loop body
LE: loop exit
PB: predicated region body
PF: predicated region fallthrough
CT: control target
= control target key end

     0   :  { %s2079_s0 = inlined_call_operand.vmem [shape: f32[16,32], index: 0, kind: input, shape index: {}]   ;;  %s2080_s1 = inlined_call_operand.vmem [shape: bf16[32,32], index: 1, kind: input, shape index: {}]   ;;  %s2081_s2 = inlined_call_operand.vmem [shape: bf16[32,32], index: 2, kind: input, shape index: {}]   ;;  %s2082_s3 = inlined_call_operand.hbm [shape: bf16[32,32], index: 3, kind: input, shape index: {}]   ;;  %s2083_s4 = inlined_call_operand.vmem [shape: f32[1,32], index: 4, kind: input, shape index: {}]   ;;  %s2084_s5 = inlined_call_operand.vmem [shape: f32[1,32], index: 5, kind: input, shape index: {}]   ;;  %s2085_s6 = inlined_call_operand.hbm [shape: f32[1,32], index: 6, kind: input, shape index: {}]   ;;  %s2086_s7 = inlined_call_operand.hbm [shape: bf16[32,32], index: 7, kind: input, shape index: {}]   ;;  %s2087_s8 = inlined_call_operand.hbm [shape: f32[1,32], index: 8, kind: input, shape index: {}]   ;;  %s2088_s9 = inlined_call_operand.vmem [shape: bf16[32,64], index: 9, kind: input, shape index: {}]   ;;  %s2089_s10 = inlined_call_operand.vmem [shape: f32[1,64], index: 10, kind: input, shape index: {}]   ;;  %s2090_s11 = inlined_call_operand.vmem [shape: bf16[64,32], index: 11, kind: input, shape index: {}]   ;;  %s2091_s12 = inlined_call_operand.vmem [shape: f32[1,32], index: 12, kind: input, shape index: {}]   ;;  %s2092_s13 = inlined_call_operand.vmem [shape: f32[1,32], index: 13, kind: input, shape index: {}]   ;;  %s2093_s14 = inlined_call_operand.vmem [shape: f32[1,32], index: 14, kind: input, shape index: {}]   ;;  %s2094_s15 = inlined_call_operand.vmem [shape: f32[1,32], index: 15, kind: input, shape index: {}]   ;;  %s2095_s16 = inlined_call_operand.vmem [shape: f32[1,32], index: 16, kind: input, shape index: {}]   ;;  %s2096_s17 = inlined_call_operand.hbm [shape: f32[16,32], index: 17, kind: output, shape index: {}]  }
   0x1   :  { %2099 = sst [smem:[#allocation15_spill]] %s2079_s0 }
   0x2   :  { %2100 = sst [smem:[#allocation16_spill]] %s2080_s1 }
   0x3   :  { %22 = vsyncpa [#allocation3], 0 }
   0x4   :  { %23 = vsyncpa [#allocation6], 0 }
   0x5   :  { %24 = vsyncpa [#allocation9], 0 }
   0x6   :  { %25 = vsyncpa [#allocation4], 0  ;;  %s1690_s24 = smov [#allocation5]   ;;  %s1691_s26 = smov [#allocation2]  }
   0x7   :  { %s54_s25 = sshll.u32 %s1690_s24, 4  ;;  %s37_s27 = sshll.u32 %s1691_s26, 4  ;;  %s55_s25 = int_to_ptr.vmem [resolvable:$true] %s54_s25  ;;  %s1796_s27 = int_to_ptr.vmem [resolvable:$true] %s37_s27 }
   0x8   :  { %s1572_s0 = scalar_lea.hbm %s2085_s6, 16 }
   0x9   :  { %p1573_p0 = scmp.ne.s32.totalorder %s2085_s6, %s1572_s0  ;;  %p1576_p1 = scmp.lt.u32.totalorder %s1572_s0, %s2085_s6 }
   0xb   :  { %p1578_p2 = pnand %p1576_p1, %p1573_p0 }
   0xd   :  { %1581 = shalt.err (!%p1578_p2)
}
   0xe   :  { %s1582_s20 = scalar_lea.vmem %s55_s25, 16  ;;  %s1586_s21 = scalar_lea.vmem %s55_s25, 32 }
   0xf   :  { %p1583_p3 = scmp.ne.s32.totalorder %s55_s25, %s1582_s20  ;;  %p1587_p4 = scmp.lt.s32.totalorder %s55_s25, %s55_s25 }
  0x10   :  { %p1588_p5 = scmp.lt.s32.totalorder %s1586_s21, %s1582_s20 }
  0x12   :  { %p1589_p6 = por %p1588_p5, %p1587_p4 }
  0x14   :  { %p1590_p7 = pnand %p1589_p6, %p1583_p3 }
  0x16   :  { %1593 = shalt.err (!%p1590_p7)
}
  0x17   :  { %57 = dma.hbm_to_vmem [thread:$0]  %s2085_s6, 16, %s55_s25, [#allocation6]  }
  0x18   :  { %s1594_s28 = scalar_lea.hbm %s2082_s3, 256 }
  0x19   :  { %p1595_p8 = scmp.ne.s32.totalorder %s2082_s3, %s1594_s28  ;;  %p1598_p9 = scmp.lt.u32.totalorder %s1594_s28, %s2082_s3 }
  0x1b   :  { %p1600_p10 = pnand %p1598_p9, %p1595_p8 }
  0x1d   :  { %1603 = shalt.err (!%p1600_p10)
}
  0x1e   :  { %s1604_s19 = scalar_lea.vmem %s1796_s27, 256  ;;  %p1609_p12 = scmp.lt.s32.totalorder %s1796_s27, %s1796_s27 }
  0x1f   :  { %p1605_p11 = scmp.ne.s32.totalorder %s1796_s27, %s1604_s19  ;;  %p1610_p13 = scmp.lt.s32.totalorder %s1604_s19, %s1604_s19 }
  0x21   :  { %p1611_p0 = por %p1610_p13, %p1609_p12 }
  0x23   :  { %p1612_p1 = pnand %p1611_p0, %p1605_p11 }
  0x25   :  { %1615 = shalt.err (!%p1612_p1)
}
  0x26   :  { %s1692_s6 = smov 64   ;;  %s1693_s25 = smov 4  }
  0x27   :  { %43 = dma.hbm_to_vmem [thread:$0]  %s2082_s3, 256, %s1796_s27, [#allocation3], %s1692_s6, %s1692_s6, %s1693_s25  }
  0x28   :  { %s1694_s21 = smov [#allocation7]   ;;  %s1695_s23 = smov [#allocation8]  }
  0x29   :  { %s63_s22 = sshll.u32 %s1694_s21, 4  ;;  %s76_s24 = sshll.u32 %s1695_s23, 4  ;;  %s64_s22 = int_to_ptr.vmem [resolvable:$true] %s63_s22  ;;  %s77_s24 = int_to_ptr.vmem [resolvable:$true] %s76_s24 }
  0x2a   :  { %s1616_s29 = scalar_lea.hbm %s2086_s7, 256 }
  0x2b   :  { %p1617_p2 = scmp.ne.s32.totalorder %s2086_s7, %s1616_s29  ;;  %p1620_p3 = scmp.lt.u32.totalorder %s1616_s29, %s2086_s7 }
  0x2d   :  { %p1622_p4 = pnand %p1620_p3, %p1617_p2 }
  0x2f   :  { %1625 = shalt.err (!%p1622_p4)
}
  0x30   :  { %s1626_s3 = scalar_lea.vmem %s64_s22, 256  ;;  %p1631_p6 = scmp.lt.s32.totalorder %s64_s22, %s64_s22 }
  0x31   :  { %p1627_p5 = scmp.ne.s32.totalorder %s64_s22, %s1626_s3  ;;  %p1632_p7 = scmp.lt.s32.totalorder %s1626_s3, %s1626_s3 }
  0x33   :  { %p1633_p8 = por %p1632_p7, %p1631_p6 }
  0x35   :  { %p1634_p9 = pnand %p1633_p8, %p1627_p5 }
  0x37   :  { %1637 = shalt.err (!%p1634_p9)
}
  0x38   :  { %69 = dma.hbm_to_vmem [thread:$0]  %s2086_s7, 256, %s64_s22, [#allocation6], %s1692_s6, %s1692_s6, %s1693_s25  }
  0x39   :  { %s1638_s23 = scalar_lea.hbm %s2087_s8, 16 }
  0x3a   :  { %p1639_p10 = scmp.ne.s32.totalorder %s2087_s8, %s1638_s23  ;;  %p1642_p11 = scmp.lt.u32.totalorder %s1638_s23, %s2087_s8 }
  0x3c   :  { %p1644_p12 = pnand %p1642_p11, %p1639_p10 }
  0x3e   :  { %1647 = shalt.err (!%p1644_p12)
}
  0x3f   :  { %s1648_s30 = scalar_lea.vmem %s77_s24, 16  ;;  %s1652_s18 = scalar_lea.vmem %s77_s24, 32 }
  0x40   :  { %p1649_p13 = scmp.ne.s32.totalorder %s77_s24, %s1648_s30  ;;  %p1653_p0 = scmp.lt.s32.totalorder %s77_s24, %s77_s24 }
  0x41   :  { %p1654_p1 = scmp.lt.s32.totalorder %s1652_s18, %s1648_s30 }
  0x43   :  { %p1655_p2 = por %p1654_p1, %p1653_p0 }
  0x45   :  { %p1656_p3 = pnand %p1655_p2, %p1649_p13 }
  0x47   :  { %1659 = shalt.err (!%p1656_p3)
}
  0x48   :  { %79 = dma.hbm_to_vmem [thread:$0]  %s2087_s8, 16, %s77_s24, [#allocation9]  }
  0x49   :  { %1682 = dma.done.wait [#allocation3], 256  }
  0x4a   :  { %1683 = vsyncadd [#allocation3], 4294967040 }
  0x4b   :  { %1684 = dma.done.wait [#allocation6], 272  }
  0x4c   :  { %1685 = vsyncadd [#allocation6], 4294967024 }
  0x4d   :  { %1686 = dma.done.wait [#allocation9], 16  }
  0x4e   :  { %1687 = vsyncadd [#allocation9], 4294967280  ;;  %v1696_v0 = vmov 0.0   ;;  %vm1697_vm0 = vmmov 0   ;;  %s2101_s22 = sld [smem:[#allocation16_spill]]  ;;  %v1519_v2 = vld [vmem:[%s2081_s2] sm:$0xff]  }
  0x4f   :  { %1342 = vmatprep.subr.bf16.mxu0 %v1696_v0  ;;  %1350 = vmatprep.subr.bf16.mxu1 %v1696_v0  ;;  %v1521_v4 = vld [vmem:[%s2081_s2 + $0x8] sm:$0xff]   ;;  %s2102_s26 = sld [smem:[#allocation15_spill]]  ;;  %vm135_vm1 = vcmask 261120   ;;  %v1522_v8 = vld [vmem:[#allocation2] sm:$0xff]   ;;  %vm380_vm2 = vcmask 64512   ;;  %s1700_s7 = smov 112  }
  0x50   :  { %1346 = vmatprep.mubr.msk.bf16.mxu0 %vm1697_vm0, %v1696_v0  ;;  %1354 = vmatprep.mubr.msk.bf16.mxu1 %vm1697_vm0, %v1696_v0  ;;  %v1523_v9 = vld [vmem:[#allocation2 + $0x8] sm:$0xff]   ;;  %v1268_v10 = vld [vmem:[%s2083_s4] ss:$0 sm:$0xff]  ;;  %s1698_s4 = smov 120   ;;  %v1276_v29 = vld [vmem:[#allocation5] ss:$0 sm:$0xff] }
  0x51   :  { %1351 = vmatpush3.bf16.msra.mxu1 %v1519_v2  ;;  %v1272_v13 = vld [vmem:[%s2084_s5] ss:$0 sm:$0xff]  ;;  %s1699_s5 = smov 104   ;;  %v569_v2 = vlaneseq  ;;  %vm624_vm4 = vcmask 130048   ;;  %s1701_s6 = smov 8   ;;  %vm921_vm6 = vcmask 195584  }
  0x52   :  { %1352 = vmatprep.subr.bf16.mxu1 %v1696_v0  ;;  %s1702_s25 = smov 16   ;;  %s1703_s8 = smov 24   ;;  %vm1152_vm7 = vcmask 523264  }
  0x54   :  { %v1518_v1 = vld [vmem:[%s2101_s22] sm:$0xff]   ;;  %v1520_v3 = vld [vmem:[%s2101_s22 + $0x8] sm:$0xff]  }
  0x55   :  { %1343 = vmatpush3.bf16.msra.mxu0 %v1518_v1  ;;  %v1874_v5 = vld [vmem:[%s2102_s26] sm:$0xff]  ;;  %v1879_v6 = vld [vmem:[%s2102_s26 + $0x8] sm:$0xff]  ;;  %1353 = vmatpush3.bf16.msra.mxu1 %v1521_v4  ;;  %v597_v4 = vand.u32 127, %v569_v2 }
  0x56   :  { %1344 = vmatprep.subr.bf16.mxu0 %v1696_v0  ;;  %v111_v7 = vpack.c.bf16 %v1879_v6, %v1874_v5  ;;  %1366 = vmatprep.subr.bf16.mxu1 %v1696_v0 }
  0x58   :  { %1355 = vmatmul.mubr.msk.bf16.vlgmr.msra.gmra.mrb[0].mxu1 %vm135_vm1, %v111_v7 }
  0x59   :  { %1345 = vmatpush3.bf16.msra.mxu0 %v1520_v3  ;;  %1368 = vmatprep.mubr.msk.bf16.mxu1 %vm1697_vm0, %v1696_v0  ;;  %v570_v3 = vshrl.u32 %v569_v2, 7 }
  0x5a   :  { %1358 = vmatprep.subr.bf16.mxu0 %v1696_v0 }
  0x5c   :  { %1347 = vmatmul.mubr.msk.bf16.vlgmr.msra.gmra.mrb[0].mxu0 %vm135_vm1, %v111_v7 }
  0x5d   :  { %1359 = vmatpush3.bf16.msra.mxu0 %v1522_v8  ;;  %1362 = vmatprep.mubr.msk.bf16.mxu0 %vm1697_vm0, %v1696_v0  ;;  %v576_v8 = vand.u32 1, %v570_v3 }
  0x5e   :  { %1360 = vmatprep.subr.bf16.mxu0 %v1696_v0 }
  0x61   :  { %1361 = vmatpush3.bf16.msra.mxu0 %v1523_v9  ;;  %v602_v9 = vand.u32 1, %v597_v4 }
  0x62   :  { %1372 = vmatprep.subr.bf16.mxu0 %v1696_v0 }
  0x63   :  { %vm1930_vm3 = vcmp.eq.s32.totalorder %v576_v8, %v602_v9 }
  0x64   :  { %1363 = vmatmul.mubr.msk.bf16.vlgmr.msra.gmra.mrb[4].mxu0 %vm135_vm1, %v111_v7  ;;  %v571_v7 = vadd.s32 8, %v570_v3 }
  0x65   :  { %1374 = vmatprep.mubr.msk.bf16.mxu0 %vm1697_vm0, %v1696_v0 }
 0x12b   :  { %v237_v14 = vpop.f32.mrb[0].mxu1 }
 0x12c   :  { %v1356_v16 = vpop.f32.mrb[1].mxu1  ;;  %v238_v21 = vadd.f32 %v1272_v13, %v237_v14 }
 0x12d   :  { %v240_v19 = vpop.f32.mrb[2].mxu1 }
 0x12e   :  { %v241_v22 = vadd.f32 %v1272_v13, %v240_v19  ;;  %v1357_v23 = vpop.f32.mrb[3].mxu1 }
 0x12f   :  { %v173_v11 = vpop.f32.mrb[0].mxu0 }
 0x130   :  { %v174_v12 = vadd.f32 %v1268_v10, %v173_v11  ;;  %v1348_v15 = vpop.f32.mrb[1].mxu0  ;;  %v1458_v26 = vpack.i.bf16 %v241_v22, %v238_v21  ;;  %v352_v27 = vpack.c.bf16 %v241_v22, %v238_v21 }
 0x131   :  { %v176_v17 = vpop.f32.mrb[2].mxu0 }
 0x132   :  { %v177_v18 = vadd.f32 %v1268_v10, %v176_v17  ;;  %v1349_v20 = vpop.f32.mrb[3].mxu0  ;;  %1459 = vrot.lane.b32.xlu0 %v1458_v26, %s1698_s4  ;;  %v385_v28 = vsel %vm380_vm2, %v352_v27, 0  ;;  %v583_v10 = vand.u32 1, %v571_v7 }
 0x133   :  { %1367 = vmatpush3.bf16.xpose.msra.mxu1 %v385_v28 }
 0x134   :  { %v328_v24 = vpack.c.bf16 %v177_v18, %v174_v12  ;;  %v1468_v25 = vpack.i.bf16 %v177_v18, %v174_v12  ;;  %1378 = vmatprep.subr.bf16.mxu1 %v1696_v0  ;;  %vm1934_vm5 = vcmp.eq.s32.totalorder %v583_v10, %v602_v9 }
 0x136   :  { %1469 = vrot.lane.b32.xlu1 %v1468_v25, %s1698_s4  ;;  %1464 = vrot.lane.b32.xlu0 %v1458_v26, %s1700_s7 }
 0x137   :  { %v301_v30 = vpop.f32.mrb[4].mxu0 }
 0x138   :  { %v302_v31 = vadd.f32 %v1276_v29, %v301_v30  ;;  %v1364_v32 = vpop.f32.mrb[5].mxu0 }
 0x139   :  { %v304_v33 = vpop.f32.mrb[6].mxu0 }
 0x13a   :  { %1474 = vrot.lane.b32.xlu1 %v1458_v26, %s1699_s5  ;;  %1479 = vrot.lane.b32.xlu0 %v1468_v25, %s1700_s7  ;;  %v305_v34 = vadd.f32 %v1276_v29, %v304_v33  ;;  %v1365_v35 = vpop.f32.mrb[7].mxu0 }
 0x13b   :  { %1369 = vmatmul.mubr.msk.bf16.vlgmr.msra.gmra.mrb[4].mxu1 %vm380_vm2, %v328_v24 }
 0x13c   :  { %1380 = vmatprep.mubr.msk.bf16.mxu1 %vm1697_vm0, %v1696_v0  ;;  %v1911_v36 = vpack.i.bf16 %v305_v34, %v302_v31  ;;  %v376_v60 = vpack.c.bf16 %v305_v34, %v302_v31 }
 0x13e   :  { %1484 = vrot.lane.b32.xlu1 %v1468_v25, %s1699_s5 }
 0x142   :  { %1489 = vrot.lane.b32.xlu1 %v1911_v36, %s1698_s4 }
 0x1a4   :  { %v1460_v38 = vpop.permute.xlu0 %1459 }
 0x1a5   :  { %v1462_v39 = vunpack.i.h.bf16 %v1460_v38  ;;  %v1461_v40 = vunpack.i.l.bf16 %v1460_v38 }
 0x1a7   :  { %v353_v41 = vpack.c.bf16 %v1462_v39, %v1461_v40 }
 0x1a8   :  { %v1470_v37 = vpop.permute.xlu1 %1469  ;;  %v1465_v43 = vpop.permute.xlu0 %1464 }
 0x1a9   :  { %v1467_v45 = vunpack.i.h.bf16 %v1465_v43  ;;  %v1466_v46 = vunpack.i.l.bf16 %v1465_v43  ;;  %v432_v48 = vsel %vm380_vm2, %v353_v41, 0  ;;  %v1472_v49 = vunpack.i.h.bf16 %v1470_v37 }
 0x1aa   :  { %1373 = vmatpush3.bf16.xpose.msra.mxu0 %v432_v48  ;;  %v1471_v50 = vunpack.i.l.bf16 %v1470_v37 }
 0x1ab   :  { %v354_v51 = vpack.c.bf16 %v1467_v45, %v1466_v46  ;;  %1384 = vmatprep.subr.bf16.mxu0 %v1696_v0 }
 0x1ac   :  { %v1475_v42 = vpop.permute.xlu1 %1474  ;;  %v1480_v52 = vpop.permute.xlu0 %1479  ;;  %v329_v55 = vpack.c.bf16 %v1472_v49, %v1471_v50 }
 0x1ad   :  { %v1477_v44 = vunpack.i.h.bf16 %v1475_v42  ;;  %v1476_v47 = vunpack.i.l.bf16 %v1475_v42  ;;  %v479_v54 = vsel %vm380_vm2, %v354_v51, 0  ;;  %v1482_v56 = vunpack.i.h.bf16 %v1480_v52 }
 0x1ae   :  { %1379 = vmatpush3.bf16.xpose.msra.mxu1 %v479_v54  ;;  %v1481_v57 = vunpack.i.l.bf16 %v1480_v52 }
 0x1af   :  { %v355_v53 = vpack.c.bf16 %v1477_v44, %v1476_v47  ;;  %1390 = vmatprep.subr.bf16.mxu1 %v1696_v0 }
 0x1b0   :  { %v1485_v58 = vpop.permute.xlu1 %1484  ;;  %v330_v61 = vpack.c.bf16 %v1482_v56, %v1481_v57 }
 0x1b1   :  { %1375 = vmatmul.mubr.msk.bf16.vlgmr.msra.gmra.mrb[8].mxu0 %vm380_vm2, %v329_v55  ;;  %v526_v59 = vsel %vm380_vm2, %v355_v53, 0  ;;  %v1487_v62 = vunpack.i.h.bf16 %v1485_v58  ;;  %v1486_v63 = vunpack.i.l.bf16 %v1485_v58 }
 0x1b2   :  { %1385 = vmatpush3.bf16.xpose.msra.mxu0 %v526_v59  ;;  %1386 = vmatprep.mubr.msk.bf16.mxu0 %vm1697_vm0, %v1696_v0 }
 0x1b3   :  { %1396 = vmatprep.subr.bf16.mxu0 %v1696_v0  ;;  %v331_v1 = vpack.c.bf16 %v1487_v62, %v1486_v63 }
 0x1b4   :  { %v1490_v21 = vpop.permute.xlu1 %1489 }
 0x1b5   :  { %1381 = vmatmul.mubr.msk.bf16.vlgmr.msra.gmra.mrb[8].mxu1 %vm380_vm2, %v330_v61  ;;  %v1492_v22 = vunpack.i.h.bf16 %v1490_v21  ;;  %v1491_v23 = vunpack.i.l.bf16 %v1490_v21 }
 0x1b6   :  { %1391 = vmatpush3.bf16.msra.mxu1 %v376_v60  ;;  %1392 = vmatprep.mubr.msk.bf16.mxu1 %vm1697_vm0, %v1696_v0 }
 0x1b7   :  { %1402 = vmatprep.subr.bf16.mxu1 %v1696_v0  ;;  %v377_v24 = vpack.c.bf16 %v1492_v22, %v1491_v23 }
 0x1b9   :  { %1387 = vmatmul.mubr.msk.bf16.vlgmr.msra.gmra.mrb[12].mxu0 %vm380_vm2, %v331_v1 }
 0x1ba   :  { %1398 = vmatprep.mubr.msk.bf16.mxu0 %vm1697_vm0, %v1696_v0  ;;  %1397 = vmatpush3.bf16.msra.mxu0 %v377_v24 }
 0x1bb   :  { %1408 = vmatprep.subr.bf16.mxu0 %v1696_v0 }
 0x20e   :  { %v421_v12 = vpop.f32.mrb[4].mxu1 }
 0x20f   :  { %v616_v14 = vsel %vm1930_vm3, %v421_v12, -1e+30  ;;  %v1370_v15 = vpop.f32.mrb[5].mxu1 }
 0x210   :  { %v424_v16 = vpop.f32.mrb[6].mxu1  ;;  %v625_v17 = vsel %vm624_vm4, %v616_v14, -inf }
 0x211   :  { %v617_v18 = vsel %vm1934_vm5, %v424_v16, -1e+30  ;;  %626 = vmax.xlane.f32.xlu0 %v625_v17  ;;  %v1371_v19 = vpop.f32.mrb[7].mxu1 }
 0x212   :  { %v628_v20 = vsel %vm624_vm4, %v617_v18, -inf }
 0x213   :  { %629 = vmax.xlane.f32.xlu1 %v628_v20 }
 0x284   :  { %v468_v25 = vpop.f32.mrb[8].mxu0 }
 0x285   :  { %v618_v26 = vsel %vm1930_vm3, %v468_v25, -1e+30  ;;  %v1376_v27 = vpop.f32.mrb[9].mxu0 }
 0x286   :  { %v471_v28 = vpop.f32.mrb[10].mxu0  ;;  %v631_v29 = vsel %vm624_vm4, %v618_v26, -inf }
 0x287   :  { %v619_v30 = vsel %vm1934_vm5, %v471_v28, -1e+30  ;;  %632 = vmax.xlane.f32.xlu0 %v631_v29  ;;  %v1377_v31 = vpop.f32.mrb[11].mxu0 }
 0x288   :  { %v515_v32 = vpop.f32.mrb[8].mxu1  ;;  %v634_v38 = vsel %vm624_vm4, %v619_v30, -inf }
 0x289   :  { %v620_v33 = vsel %vm1930_vm3, %v515_v32, -1e+30  ;;  %v1382_v34 = vpop.f32.mrb[9].mxu1 }
 0x28a   :  { %v518_v35 = vpop.f32.mrb[10].mxu1  ;;  %v637_v37 = vsel %vm624_vm4, %v620_v33, -inf }
 0x28b   :  { %v621_v39 = vsel %vm1934_vm5, %v518_v35, -1e+30  ;;  %v1383_v40 = vpop.f32.mrb[11].mxu1  ;;  %638 = vmax.xlane.f32.xlu1 %v637_v37  ;;  %635 = vmax.xlane.f32.xlu0 %v634_v38 }
 0x28c   :  { %v562_v41 = vpop.f32.mrb[12].mxu0  ;;  %v640_v45 = vsel %vm624_vm4, %v621_v39, -inf }
 0x28d   :  { %v622_v42 = vsel %vm1930_vm3, %v562_v41, -1e+30  ;;  %v1388_v43 = vpop.f32.mrb[13].mxu0 }
 0x28e   :  { %v565_v44 = vpop.f32.mrb[14].mxu0  ;;  %v643_v46 = vsel %vm624_vm4, %v622_v42, -inf }
 0x28f   :  { %v623_v47 = vsel %vm1934_vm5, %v565_v44, -1e+30  ;;  %641 = vmax.xlane.f32.xlu0 %v640_v45  ;;  %644 = vmax.xlane.f32.xlu1 %v643_v46  ;;  %v1389_v48 = vpop.f32.mrb[15].mxu0 }
 0x290   :  { %v646_v49 = vsel %vm624_vm4, %v623_v47, -inf }
 0x293   :  { %647 = vmax.xlane.f32.xlu0 %v646_v49 }
 0x29e   :  { %v627_v50 = vpop.xlane.xlu0 %626 }
 0x29f   :  { %v649_v51 = vsub.f32 %v616_v14, %v627_v50 }
 0x2a0   :  { %v630_v52 = vpop.xlane.xlu1 %629  ;;  %1499 = vrot.lane.b32.xlu1 %v1911_v36, %s1699_s5 }
 0x2a1   :  { %v657_v53 = vmul.f32 1.442695, %v649_v51  ;;  %v650_v54 = vsub.f32 %v617_v18, %v630_v52  ;;  %v1524_v51 = vld [vmem:[#allocation7] sm:$0xff]  }
 0x2a3   :  { %v659_v55 = vmul.f32 1.442695, %v650_v54  ;;  %1532 = vpow2.f32 %v657_v53 }
 0x2a5   :  { %1534 = vpow2.f32 %v659_v55 }
 0x2a9   :  { %1494 = vrot.lane.b32.xlu0 %v1911_v36, %s1700_s7  ;;  %s1704_s7 = smov [#allocation10]  }
 0x2ad   :  { %v1967_v56 = vpop.eup %1532 }
 0x2af   :  { %v1969_v57 = vpop.eup %1534 }
 0x2b0   :  { %v697_v58 = vpack.c.bf16 %v1969_v57, %v1967_v56  ;;  %v676_v40 = vsel %vm624_vm4, %v1969_v57, 0.0 }
 0x2b2   :  { %1393 = vmatmul.mubr.msk.bf16.vlgmr.msra.gmra.mrb[12].mxu1 %vm624_vm4, %v697_v58 }
 0x2b3   :  { %1404 = vmatprep.mubr.msk.bf16.mxu1 %vm1697_vm0, %v1696_v0 }
 0x314   :  { %v633_v59 = vpop.xlane.xlu0 %632 }
 0x315   :  { %v651_v60 = vsub.f32 %v618_v26, %v633_v59 }
 0x317   :  { %v661_v61 = vmul.f32 1.442695, %v651_v60 }
 0x318   :  { %v639_v62 = vpop.xlane.xlu1 %638  ;;  %v636_v63 = vpop.xlane.xlu0 %635 }
 0x319   :  { %1536 = vpow2.f32 %v661_v61  ;;  %v653_v1 = vsub.f32 %v620_v33, %v639_v62  ;;  %v652_v36 = vsub.f32 %v619_v30, %v636_v63  ;;  %v1525_v61 = vld [vmem:[#allocation7 + $0x8] sm:$0xff]  }
 0x31b   :  { %v665_v2 = vmul.f32 1.442695, %v653_v1  ;;  %v663_v3 = vmul.f32 1.442695, %v652_v36 }
 0x31c   :  { %v642_v4 = vpop.xlane.xlu0 %641  ;;  %v645_v7 = vpop.xlane.xlu1 %644 }
 0x31d   :  { %1538 = vpow2.f32 %v665_v2  ;;  %v654_v8 = vsub.f32 %v621_v39, %v642_v4  ;;  %v655_v9 = vsub.f32 %v622_v42, %v645_v7  ;;  %v673_v39 = vsel %vm624_vm4, %v1967_v56, 0.0 }
 0x31e   :  { %1540 = vpow2.f32 %v663_v3 }
 0x31f   :  { %v667_v10 = vmul.f32 1.442695, %v654_v8  ;;  %v669_v11 = vmul.f32 1.442695, %v655_v9 }
 0x320   :  { %v648_v12 = vpop.xlane.xlu0 %647  ;;  %v1500_v15 = vpop.permute.xlu1 %1499 }
 0x321   :  { %1542 = vpow2.f32 %v667_v10  ;;  %v656_v13 = vsub.f32 %v623_v47, %v648_v12  ;;  %v1502_v21 = vunpack.i.h.bf16 %v1500_v15  ;;  %v1501_v22 = vunpack.i.l.bf16 %v1500_v15 }
 0x322   :  { %1544 = vpow2.f32 %v669_v11 }
 0x323   :  { %v1537_v14 = vpop.eup %1536  ;;  %v671_v16 = vmul.f32 1.442695, %v656_v13  ;;  %v379_v28 = vpack.c.bf16 %v1502_v21, %v1501_v22 }
 0x324   :  { %v1495_v17 = vpop.permute.xlu0 %1494  ;;  %v679_v18 = vsel %vm624_vm4, %v1537_v14, 0.0 }
 0x325   :  { %1546 = vpow2.f32 %v671_v16  ;;  %v1497_v19 = vunpack.i.h.bf16 %v1495_v17  ;;  %v1496_v20 = vunpack.i.l.bf16 %v1495_v17  ;;  %680 = vadd.xlane.f32.xlu1 %v679_v18 }
 0x327   :  { %v1539_v23 = vpop.eup %1538  ;;  %v378_v24 = vpack.c.bf16 %v1497_v19, %v1496_v20 }
 0x328   :  { %v1541_v25 = vpop.eup %1540  ;;  %v685_v26 = vsel %vm624_vm4, %v1539_v23, 0.0 }
 0x329   :  { %686 = vadd.xlane.f32.xlu0 %v685_v26  ;;  %1403 = vmatpush3.bf16.msra.mxu1 %v378_v24  ;;  %v698_v27 = vpack.c.bf16 %v1541_v25, %v1537_v14  ;;  %v682_v31 = vsel %vm624_vm4, %v1541_v25, 0.0 }
 0x32a   :  { %1414 = vmatprep.subr.bf16.mxu1 %v1696_v0 }
 0x32b   :  { %v1543_v29 = vpop.eup %1542  ;;  %1399 = vmatmul.mubr.msk.bf16.vlgmr.msra.gmra.mrb[16].mxu0 %vm624_vm4, %v698_v27 }
 0x32c   :  { %1409 = vmatpush3.bf16.msra.mxu0 %v379_v28  ;;  %v688_v30 = vsel %vm624_vm4, %v1543_v29, 0.0  ;;  %v699_v32 = vpack.c.bf16 %v1543_v29, %v1539_v23  ;;  %1410 = vmatprep.mubr.msk.bf16.mxu0 %vm1697_vm0, %v1696_v0  ;;  %v1545_v33 = vpop.eup %1544 }
 0x32d   :  { %689 = vadd.xlane.f32.xlu1 %v688_v30  ;;  %683 = vadd.xlane.f32.xlu0 %v682_v31  ;;  %v691_v35 = vsel %vm624_vm4, %v1545_v33, 0.0 }
 0x32e   :  { %1405 = vmatmul.mubr.msk.bf16.vlgmr.msra.gmra.mrb[16].mxu1 %vm624_vm4, %v699_v32  ;;  %1422 = vmatprep.subr.bf16.mxu0 %v1696_v0 }
 0x32f   :  { %v1547_v34 = vpop.eup %1546  ;;  %1418 = vmatprep.mubr.msk.bf16.mxu1 %vm1697_vm0, %v1696_v0  ;;  %1415 = vmatpush3.bf16.msra.mxu1 %v1524_v51 }
 0x330   :  { %v694_v37 = vsel %vm624_vm4, %v1547_v34, 0.0  ;;  %v700_v38 = vpack.c.bf16 %v1547_v34, %v1545_v33  ;;  %1416 = vmatprep.subr.bf16.mxu1 %v1696_v0 }
 0x331   :  { %692 = vadd.xlane.f32.xlu0 %v691_v35  ;;  %695 = vadd.xlane.f32.xlu1 %v694_v37 }
 0x333   :  { %1411 = vmatmul.mubr.msk.bf16.vlgmr.msra.gmra.mrb[20].mxu0 %vm624_vm4, %v700_v38  ;;  %1417 = vmatpush3.bf16.msra.mxu1 %v1525_v61 }
 0x334   :  { %1426 = vmatprep.mubr.msk.bf16.mxu0 %vm1697_vm0, %v1696_v0  ;;  %1430 = vmatprep.subr.bf16.mxu1 %v1696_v0 }
 0x335   :  { %674 = vadd.xlane.f32.xlu0 %v673_v39  ;;  %677 = vadd.xlane.f32.xlu1 %v676_v40 }
 0x385   :  { %v1997_v41 = vpop.f32.mrb[12].mxu1 }
 0x386   :  { %v1394_v42 = vpop.f32.mrb[13].mxu1 }
 0x387   :  { %v1999_v43 = vpop.f32.mrb[14].mxu1 }
 0x388   :  { %v1395_v44 = vpop.f32.mrb[15].mxu1 }
 0x3b2   :  { %v681_v46 = vpop.xlane.xlu1 %680 }
 0x3b3   :  { %1548 = vrcp.f32 %v681_v46 }
 0x3b6   :  { %v687_v45 = vpop.xlane.xlu0 %686 }
 0x3ba   :  { %v684_v47 = vpop.xlane.xlu0 %683  ;;  %v690_v48 = vpop.xlane.xlu1 %689 }
 0x3bb   :  { %1550 = vrcp.f32 %v684_v47 }
 0x3bc   :  { %1552 = vrcp.f32 %v687_v45 }
 0x3bd   :  { %1554 = vrcp.f32 %v690_v48  ;;  %v1549_v53 = vpop.eup %1548 }
 0x3be   :  { %v696_v49 = vpop.xlane.xlu1 %695  ;;  %v693_v50 = vpop.xlane.xlu0 %692 }
 0x3bf   :  { %1556 = vrcp.f32 %v696_v49 }
 0x3c0   :  { %1558 = vrcp.f32 %v693_v50 }
 0x3c2   :  { %v678_v18 = vpop.xlane.xlu1 %677  ;;  %v675_v19 = vpop.xlane.xlu0 %674 }
 0x3c3   :  { %1560 = vrcp.f32 %v678_v18  ;;  %v1293_v18 = vld [vmem:[%s2093_s14] ss:$0 sm:$0xff] }
 0x3c4   :  { %1562 = vrcp.f32 %v675_v19 }
 0x3c5   :  { %v1551_v55 = vpop.eup %1550 }
 0x3c6   :  { %v1553_v62 = vpop.eup %1552 }
 0x3c7   :  { %v1555_v1 = vpop.eup %1554 }
 0x3c9   :  { %v1557_v10 = vpop.eup %1556 }
 0x3ca   :  { %v1559_v12 = vpop.eup %1558 }
 0x3cd   :  { %v1561_v21 = vpop.eup %1560 }
 0x3ce   :  { %v1563_v23 = vpop.eup %1562  ;;  %v880_v29 = vmul.f32 %v1561_v21, %v1999_v43 }
 0x3cf   :  { %v878_v28 = vmul.f32 %v1563_v23, %v1997_v41  ;;  %v1288_v41 = vld [vmem:[#allocation8] ss:$0 sm:$0xff]  ;;  %v1530_v23 = vld [vmem:[%s2090_s11 + $0x10] sm:$0xff]  }
 0x3fe   :  { %v782_v52 = vpop.f32.mrb[16].mxu0 }
 0x3ff   :  { %v1400_v54 = vpop.f32.mrb[17].mxu0  ;;  %v882_v57 = vmul.f32 %v1549_v53, %v782_v52 }
 0x400   :  { %v785_v56 = vpop.f32.mrb[18].mxu0 }
 0x401   :  { %v884_v58 = vmul.f32 %v1551_v55, %v785_v56  ;;  %v1401_v59 = vpop.f32.mrb[19].mxu0  ;;  %v826_v60 = vpop.f32.mrb[16].mxu1  ;;  %v1528_v56 = vld [vmem:[%s2090_s11] sm:$0xff]  }
 0x402   :  { %v1406_v63 = vpop.f32.mrb[17].mxu1  ;;  %v886_v3 = vmul.f32 %v1553_v62, %v826_v60 }
 0x403   :  { %v1503_v36 = vpack.i.bf16 %v884_v58, %v882_v57  ;;  %v829_v2 = vpop.f32.mrb[18].mxu1  ;;  %v1529_v57 = vld [vmem:[%s2090_s11 + $0x8] sm:$0xff]  }
 0x404   :  { %v888_v4 = vmul.f32 %v1555_v1, %v829_v2  ;;  %v1407_v7 = vpop.f32.mrb[19].mxu1 }
 0x405   :  { %1504 = vrot.lane.b32.xlu0 %v1503_v36, %s1701_s6 }
 0x406   :  { %v1508_v8 = vpack.i.bf16 %v888_v4, %v886_v3  ;;  %v870_v9 = vpop.f32.mrb[20].mxu0 }
 0x407   :  { %v1412_v11 = vpop.f32.mrb[21].mxu0  ;;  %v890_v14 = vmul.f32 %v1559_v12, %v870_v9 }
 0x408   :  { %v873_v13 = vpop.f32.mrb[22].mxu0  ;;  %1509 = vrot.lane.b32.xlu1 %v1508_v8, %s1702_s25  ;;  %s1254_s25 = sshll.u32 %s1704_s7, 4  ;;  %s1255_s25 = int_to_ptr.vmem [resolvable:$true] %s1254_s25 }
 0x409   :  { %v892_v15 = vmul.f32 %v1557_v10, %v873_v13  ;;  %v1413_v16 = vpop.f32.mrb[23].mxu0  ;;  %v1292_v13 = vld [vmem:[%s2092_s13] ss:$0 sm:$0xff]  ;;  %p1665_p5 = scmp.lt.s32.totalorder %s1255_s25, %s1255_s25 }
 0x40b   :  { %v1513_v17 = vpack.i.bf16 %v892_v15, %v890_v14 }
 0x40d   :  { %1514 = vrot.lane.b32.xlu1 %v1513_v17, %s1703_s8 }
 0x477   :  { %v1505_v20 = vpop.permute.xlu0 %1504 }
 0x478   :  { %v1507_v24 = vunpack.i.h.bf16 %v1505_v20  ;;  %v1506_v25 = vunpack.i.l.bf16 %v1505_v20 }
 0x47a   :  { %v1510_v22 = vpop.permute.xlu1 %1509  ;;  %v918_v31 = vsel %vm380_vm2, %v880_v29, %v1507_v24  ;;  %v917_v32 = vsel %vm380_vm2, %v878_v28, %v1506_v25  ;;  %v1531_v24 = vld [vmem:[%s2090_s11 + $0x18] sm:$0xff]   ;;  %v1294_v25 = vld [vmem:[%s2089_s10] ss:$0 sm:$0xff] }
 0x47b   :  { %v1512_v26 = vunpack.i.h.bf16 %v1510_v22  ;;  %v1511_v27 = vunpack.i.l.bf16 %v1510_v22 }
 0x47d   :  { %v919_v35 = vsel %vm624_vm4, %v917_v32, %v1511_v27  ;;  %v920_v37 = vsel %vm624_vm4, %v918_v31, %v1512_v26 }
 0x47f   :  { %v1515_v30 = vpop.permute.xlu1 %1514 }
 0x480   :  { %v1517_v33 = vunpack.i.h.bf16 %v1515_v30  ;;  %v1516_v34 = vunpack.i.l.bf16 %v1515_v30 }
 0x482   :  { %v923_v38 = vsel %vm921_vm6, %v920_v37, %v1517_v33  ;;  %v922_v39 = vsel %vm921_vm6, %v919_v35, %v1516_v34 }
 0x483   :  { %v924_v40 = vpack.c.bf16 %v923_v38, %v922_v39 }
 0x485   :  { %1419 = vmatmul.mubr.msk.bf16.vlgmr.msra.gmra.mrb[20].mxu1 %vm135_vm1, %v924_v40 }
 0x486   :  { %1438 = vmatprep.mubr.msk.bf16.mxu1 %vm1697_vm0, %v1696_v0  ;;  %1431 = vmatpush3.bf16.msra.mxu1 %v1528_v56 }
 0x487   :  { %1432 = vmatprep.subr.bf16.mxu1 %v1696_v0 }
 0x48a   :  { %1433 = vmatpush3.bf16.msra.mxu1 %v1529_v57 }
 0x48b   :  { %1434 = vmatprep.subr.bf16.mxu1 %v1696_v0 }
 0x48e   :  { %1435 = vmatpush3.bf16.msra.mxu1 %v1530_v23 }
 0x48f   :  { %1436 = vmatprep.subr.bf16.mxu1 %v1696_v0 }
 0x492   :  { %1437 = vmatpush3.bf16.msra.mxu1 %v1531_v24 }
 0x558   :  { %v985_v42 = vpop.f32.mrb[20].mxu1 }
 0x559   :  { %v986_v43 = vadd.f32 %v1288_v41, %v985_v42  ;;  %v1420_v44 = vpop.f32.mrb[21].mxu1 }
 0x55a   :  { %v988_v45 = vpop.f32.mrb[22].mxu1 }
 0x55b   :  { %v992_v46 = vadd.f32 %v986_v43, %v1874_v5  ;;  %v989_v47 = vadd.f32 %v1288_v41, %v988_v45  ;;  %v1421_v48 = vpop.f32.mrb[23].mxu1  ;;  %v1526_v5 = vld [vmem:[%s2088_s9] sm:$0xff]  }
 0x55c   :  { %1423 = vmatpush3.bf16.msra.mxu0 %v1526_v5 }
 0x55d   :  { %v993_v49 = vadd.f32 %v989_v47, %v1879_v6  ;;  %v994_v50 = vsel %vm135_vm1, %v992_v46, 0.0  ;;  %v1002_v51 = vmul.f32 %v992_v46, %v992_v46  ;;  %v1527_v6 = vld [vmem:[%s2088_s9 + $0x8] sm:$0xff]   ;;  %1424 = vmatprep.subr.bf16.mxu0 %v1696_v0  ;;  %v1298_v0 = vld [vmem:[%s2091_s12] ss:$0 sm:$0xff] }
 0x55e   :  { %995 = vadd.xlane.f32.xlu0 %v994_v50 }
 0x55f   :  { %v997_v52 = vsel %vm135_vm1, %v993_v49, 0.0  ;;  %v1004_v53 = vsel %vm135_vm1, %v1002_v51, 0.0  ;;  %v1003_v54 = vmul.f32 %v993_v49, %v993_v49 }
 0x560   :  { %998 = vadd.xlane.f32.xlu1 %v997_v52  ;;  %1425 = vmatpush3.bf16.msra.mxu0 %v1527_v6 }
 0x561   :  { %v1007_v55 = vsel %vm135_vm1, %v1003_v54, 0.0 }
 0x562   :  { %1005 = vadd.xlane.f32.xlu0 %v1004_v53 }
 0x566   :  { %1008 = vadd.xlane.f32.xlu0 %v1007_v55 }
 0x5eb   :  { %v996_v58 = vpop.xlane.xlu0 %995 }
 0x5ec   :  { %v1000_v59 = vmul.f32 0.03125, %v996_v58 }
 0x5ed   :  { %v999_v60 = vpop.xlane.xlu1 %998 }
 0x5ee   :  { %v1012_v62 = vmul.f32 %v1000_v59, %v1000_v59  ;;  %v1001_v63 = vmul.f32 0.03125, %v999_v60  ;;  %v1016_v10 = vsub.f32 %v992_v46, %v1000_v59 }
 0x5ef   :  { %v1006_v61 = vpop.xlane.xlu0 %1005 }
 0x5f0   :  { %v1010_v1 = vmul.f32 0.03125, %v1006_v61  ;;  %v1013_v3 = vmul.f32 %v1001_v63, %v1001_v63  ;;  %v1017_v14 = vsub.f32 %v993_v49, %v1001_v63 }
 0x5f2   :  { %v1014_v36 = vsub.f32 %v1010_v1, %v1012_v62  ;;  %v1304_v1 = vld [vmem:[%s2094_s15] ss:$0 sm:$0xff]  ;;  %s1660_s15 = scalar_lea.vmem %s1255_s25, 256 }
 0x5f3   :  { %v1009_v2 = vpop.xlane.xlu0 %1008  ;;  %p1661_p4 = scmp.ne.s32.totalorder %s1255_s25, %s1660_s15  ;;  %p1666_p6 = scmp.lt.s32.totalorder %s1660_s15, %s1660_s15 }
 0x5f4   :  { %v1018_v4 = vadd.f32 1e-05, %v1014_v36  ;;  %v1011_v7 = vmul.f32 0.03125, %v1009_v2 }
 0x5f5   :  { %p1667_p7 = por %p1666_p6, %p1665_p5 }
 0x5f6   :  { %1564 = vrsqrt.f32 %v1018_v4  ;;  %v1015_v8 = vsub.f32 %v1011_v7, %v1013_v3  ;;  %v1305_v4 = vld [vmem:[%s2095_s16] ss:$0 sm:$0xff] }
 0x5f7   :  { %p1668_p8 = pnand %p1667_p7, %p1661_p4 }
 0x5f8   :  { %v1019_v9 = vadd.f32 1e-05, %v1015_v8 }
 0x5fa   :  { %1566 = vrsqrt.f32 %v1019_v9 }
 0x600   :  { %v1565_v11 = vpop.eup %1564 }
 0x601   :  { %v1022_v12 = vmul.f32 %v1565_v11, %v1016_v10 }
 0x603   :  { %v1031_v17 = vmul.f32 %v1292_v13, %v1022_v12 }
 0x604   :  { %v1567_v15 = vpop.eup %1566 }
 0x605   :  { %v1023_v16 = vmul.f32 %v1567_v15, %v1017_v14  ;;  %v1040_v20 = vadd.f32 %v1293_v18, %v1031_v17 }
 0x607   :  { %v1032_v19 = vmul.f32 %v1292_v13, %v1023_v16 }
 0x609   :  { %v1041_v21 = vadd.f32 %v1293_v18, %v1032_v19 }
 0x60b   :  { %v1042_v22 = vpack.c.bf16 %v1041_v21, %v1040_v20 }
 0x60d   :  { %1427 = vmatmul.mubr.msk.bf16.vlgmr.msra.gmra.mrb[24].mxu0 %vm135_vm1, %v1042_v22 }
 0x6e0   :  { %v1103_v26 = vpop.f32.mrb[24].mxu0 }
 0x6e1   :  { %v1104_v27 = vadd.f32 %v1294_v25, %v1103_v26  ;;  %v1428_v28 = vpop.f32.mrb[25].mxu0 }
 0x6e2   :  { %v1106_v29 = vpop.f32.mrb[26].mxu0 }
 0x6e3   :  { %v1107_v30 = vadd.f32 %v1294_v25, %v1106_v29  ;;  %v1429_v31 = vpop.f32.mrb[27].mxu0  ;;  %v1110_v32 = vmax.f32 %v1104_v27, 0.0 }
 0x6e5   :  { %v1111_v33 = vmax.f32 %v1107_v30, 0.0 }
 0x6e7   :  { %v1112_v34 = vpack.c.bf16 %v1111_v33, %v1110_v32 }
 0x6e9   :  { %1439 = vmatmul.mubr.msk.bf16.vlgmr.msra.gmra.mrb[24].mxu1 %vm1152_vm7, %v1112_v34 }
 0x7bc   :  { %v1190_v35 = vpop.f32.mrb[24].mxu1 }
 0x7bd   :  { %v1191_v37 = vadd.f32 %v1298_v0, %v1190_v35  ;;  %v1440_v38 = vpop.f32.mrb[25].mxu1 }
 0x7be   :  { %v1193_v39 = vpop.f32.mrb[26].mxu1 }
 0x7bf   :  { %v1197_v40 = vadd.f32 %v1191_v37, %v1040_v20  ;;  %v1194_v41 = vadd.f32 %v1298_v0, %v1193_v39  ;;  %v1441_v42 = vpop.f32.mrb[27].mxu1 }
 0x7c1   :  { %v1198_v43 = vadd.f32 %v1194_v41, %v1041_v21  ;;  %v1199_v44 = vsel %vm135_vm1, %v1197_v40, 0.0  ;;  %v1207_v45 = vmul.f32 %v1197_v40, %v1197_v40 }
 0x7c2   :  { %1200 = vadd.xlane.f32.xlu1 %v1199_v44 }
 0x7c3   :  { %v1202_v46 = vsel %vm135_vm1, %v1198_v43, 0.0  ;;  %v1208_v47 = vmul.f32 %v1198_v43, %v1198_v43  ;;  %v1209_v48 = vsel %vm135_vm1, %v1207_v45, 0.0 }
 0x7c4   :  { %1203 = vadd.xlane.f32.xlu0 %v1202_v46 }
 0x7c5   :  { %v1212_v49 = vsel %vm135_vm1, %v1208_v47, 0.0 }
 0x7c6   :  { %1210 = vadd.xlane.f32.xlu1 %v1209_v48 }
 0x7c8   :  { %1213 = vadd.xlane.f32.xlu0 %v1212_v49 }
 0x84f   :  { %v1201_v50 = vpop.xlane.xlu1 %1200 }
 0x850   :  { %v1205_v51 = vmul.f32 0.03125, %v1201_v50 }
 0x851   :  { %v1204_v52 = vpop.xlane.xlu0 %1203 }
 0x852   :  { %v1206_v53 = vmul.f32 0.03125, %v1204_v52  ;;  %v1217_v55 = vmul.f32 %v1205_v51, %v1205_v51  ;;  %v1221_v62 = vsub.f32 %v1197_v40, %v1205_v51 }
 0x853   :  { %v1211_v54 = vpop.xlane.xlu1 %1210 }
 0x854   :  { %v1215_v5 = vmul.f32 0.03125, %v1211_v54  ;;  %v1218_v56 = vmul.f32 %v1206_v53, %v1206_v53  ;;  %v1222_v36 = vsub.f32 %v1198_v43, %v1206_v53 }
 0x855   :  { %v1214_v6 = vpop.xlane.xlu0 %1213 }
 0x856   :  { %v1219_v57 = vsub.f32 %v1215_v5, %v1217_v55  ;;  %v1216_v58 = vmul.f32 0.03125, %v1214_v6 }
 0x858   :  { %v1223_v59 = vadd.f32 1e-05, %v1219_v57  ;;  %v1220_v60 = vsub.f32 %v1216_v58, %v1218_v56 }
 0x85a   :  { %1568 = vrsqrt.f32 %v1223_v59  ;;  %v1224_v61 = vadd.f32 1e-05, %v1220_v60 }
 0x85c   :  { %1570 = vrsqrt.f32 %v1224_v61 }
 0x864   :  { %v1569_v63 = vpop.eup %1568 }
 0x865   :  { %v1227_v2 = vmul.f32 %v1569_v63, %v1221_v62 }
 0x866   :  { %v1571_v3 = vpop.eup %1570 }
 0x867   :  { %v1228_v7 = vmul.f32 %v1571_v3, %v1222_v36  ;;  %v1236_v8 = vmul.f32 %v1304_v1, %v1227_v2 }
 0x869   :  { %v1237_v9 = vmul.f32 %v1304_v1, %v1228_v7  ;;  %v1245_v10 = vadd.f32 %v1305_v4, %v1236_v8 }
 0x86b   :  { %v1246_v11 = vadd.f32 %v1305_v4, %v1237_v9  ;;  %1247 = vst.msk [vmem:[#allocation10] sm:$0xff] %vm135_vm1, %v1245_v10 }
 0x86d   :  { %1248 = vst.msk [vmem:[#allocation10 + $0x8] sm:$0xff] %vm135_vm1, %v1246_v11 }
 0x86e   :  { %1671 = shalt.err (!%p1668_p8)
}
 0x86f   :  { %s1672_s22 = scalar_lea.hbm %s2096_s17, 256 }
 0x870   :  { %p1673_p9 = scmp.ne.s32.totalorder %s2096_s17, %s1672_s22  ;;  %p1676_p10 = scmp.lt.u32.totalorder %s1672_s22, %s2096_s17 }
 0x872   :  { %p1678_p11 = pnand %p1676_p10, %p1673_p9 }
 0x874   :  { %1681 = shalt.err (!%p1678_p11)
}
 0x875   :  { %s1705_s1 = smov 128  }
 0x876   :  { %1260 = dma.vmem_to_hbm [thread:$0]  %s1255_s25, 256, %s2096_s17, [#allocation4], %s1705_s1, %s1705_s1, %s1701_s6  }
 0x877   :  { %1688 = dma.done.wait [#allocation4], 256  }
 0x878   :  { %1689 = vsyncadd [#allocation4], 4294967040 }
 0x879   :  { %1264 = vsyncpa [#allocation3], 1 }
 0x87a   :  { %1265 = vsyncpa [#allocation6], 1 }
 0x87b   :  { %1266 = vsyncpa [#allocation9], 1 }
 0x87c   :  { %1267 = vsyncpa [#allocation4], 1 }

</bundles_post_ra>
